<compile_context>
chip_gen: v7x
topology: tpu7x:2x2x1
jax: 0.10.0
libtpu: 0.0.40
codegen_flags: <defaults>
</compile_context>

<pallas_src>
import math

import jax
import jax.numpy as jnp
from jax import lax
from jax.experimental import pallas as pl
from jax.experimental.pallas import tpu as pltpu

_LN_EPS = 1e-5  # torch.nn.LayerNorm default


# ---------------------------------------------------------------------------
# DFT bases (host side, built once per distinct size).
# ---------------------------------------------------------------------------
def _dft_cos_sin(n: int):
    """cos/sin of 2*pi*k*m/n; k*m reduced mod n in int32 first so the angle
    stays accurate even when k*m would exceed the f32 mantissa (large n)."""
    k = jnp.arange(n, dtype=jnp.int32)
    km = (k[:, None] * k[None, :]) % jnp.int32(n)
    ang = (2.0 * jnp.pi / float(n)) * km.astype(jnp.float32)
    return jnp.cos(ang), jnp.sin(ang)


def _seq_basis(l: int):
    cl, sl = _dft_cos_sin(l)
    return jnp.concatenate([cl, sl], axis=0)          # (2L, L) = [C_L; S_L]


def _hidden_basis(d: int):
    cd, sd = _dft_cos_sin(d)
    return jnp.concatenate([cd, -sd], axis=0)         # (2D, D) = [C_D; -S_D]


# ---------------------------------------------------------------------------
# Kernels
# ---------------------------------------------------------------------------
def _layer_norm_rows(h, gamma, beta):
    """LayerNorm over the last (lane) dim of a (rows, D) f32 array."""
    mu = jnp.mean(h, axis=-1, keepdims=True)
    c = h - mu
    var = jnp.mean(c * c, axis=-1, keepdims=True)
    return c * lax.rsqrt(var + _LN_EPS) * gamma + beta


def _fnet_layer_kernel(x_ref, a_ref, bd_ref, g1_ref, be1_ref,
                       w1_ref, b1_ref, w2_ref, b2_ref, g2_ref, be2_ref,
                       o_ref):
    B, L, D = x_ref.shape
    f32 = jnp.float32

    x = x_ref[...]                                # (B, L, D), activation dtype
    x32 = x.astype(f32)

    # ---- token mixing: Re(FFT2(x)) as two batch-folded MXU matmuls ---------
    # stage 1: [C_L; S_L] @ x[b] for all b (one batched dot, f32 accumulate).
    a_b = jnp.broadcast_to(a_ref[...], (B, 2 * L, L))
    t = lax.dot_general(a_b, x,
                        dimension_numbers=(((2,), (1,)), ((0,), (0,))),
                        preferred_element_type=f32)           # (B, 2L, D)
    # [cos; sin] rows -> [cos | sin] lanes.
    g = jnp.concatenate([t[:, :L, :], t[:, L:, :]], axis=-1)  # (B, L, 2D)
    # stage 2: fold batch*seq into MXU rows; the cos-sin subtraction is fused
    # into the matmul by the pre-negated [C_D; -S_D] operand.
    mix = jnp.dot(g.reshape(B * L, 2 * D).astype(bd_ref.dtype), bd_ref[...],
                  preferred_element_type=f32)                 # (B*L, D)

    # ---- residual + LayerNorm1 (f32 epilogue) -------------------------------
    h = _layer_norm_rows(x32.reshape(B * L, D) + mix,
                         g1_ref[...].astype(f32), be1_ref[...].astype(f32))

    # ---- position-wise FFN (the 1x1 convs) + residual + LayerNorm2 ----------
    y = jnp.dot(h.astype(w1_ref.dtype), w1_ref[...],
                preferred_element_type=f32) + b1_ref[...].astype(f32)
    y = jnp.maximum(y, 0.0)                                   # ReLU
    y = jnp.dot(y.astype(w2_ref.dtype), w2_ref[...],
                preferred_element_type=f32) + b2_ref[...].astype(f32)
    z = _layer_norm_rows(h + y, g2_ref[...].astype(f32), be2_ref[...].astype(f32))

    # single lane-dense output slab, cast back to the activation dtype
    o_ref[...] = z.reshape(B, L, D).astype(o_ref.dtype)


def _final_norm_kernel(x_ref, g_ref, b_ref, o_ref):
    B, L, D = x_ref.shape
    f32 = jnp.float32
    x = x_ref[...].astype(f32).reshape(B * L, D)
    z = _layer_norm_rows(x, g_ref[...].astype(f32), b_ref[...].astype(f32))
    o_ref[...] = z.reshape(B, L, D).astype(o_ref.dtype)


# ---------------------------------------------------------------------------
# Wrappers
# ---------------------------------------------------------------------------
def _fnet_layer_forward(x, a_basis, bd_basis, p):
    B, L, D = x.shape
    F = p["w1"].shape[0]
    dt = x.dtype
    itm = x.dtype.itemsize

    # Conv weights pre-transposed host-side (never transpose inside the kernel).
    w1t = jnp.transpose(p["w1"]).astype(dt)   # (D, F)
    w2t = jnp.transpose(p["w2"]).astype(dt)   # (F, D)
    a = a_basis.astype(dt)                    # (2L, L)
    bd = bd_basis.astype(dt)                  # (2D, D)

    flops = int(2 * B * (2 * L) * L * D          # stage-1 mixing
                + 2 * (B * L) * (2 * D) * D      # stage-2 mixing
                + 4 * B * L * D * F              # FFN matmuls
                + 20 * B * L * D)                # residual / LayerNorm epilogue
    bytes_accessed = int((2 * B * L * D + 2 * L * L + 2 * D * D + 2 * D * F) * itm
                         + (6 * D + F) * 4)

    return pl.pallas_call(
        _fnet_layer_kernel,
        out_shape=jax.ShapeDtypeStruct((B, L, D), dt),
        grid=(1,),   # single step: constants staged into VMEM exactly once
        in_specs=[
            pl.BlockSpec((B, L, D), lambda i: (0, 0, 0)),       # x
            pl.BlockSpec((2 * L, L), lambda i: (0, 0)),         # [C_L; S_L]
            pl.BlockSpec((2 * D, D), lambda i: (0, 0)),         # [C_D; -S_D]
            pl.BlockSpec((1, D), lambda i: (0, 0)),             # ln1 gamma
            pl.BlockSpec((1, D), lambda i: (0, 0)),             # ln1 beta
            pl.BlockSpec((D, F), lambda i: (0, 0)),             # W1^T
            pl.BlockSpec((1, F), lambda i: (0, 0)),             # b1
            pl.BlockSpec((F, D), lambda i: (0, 0)),             # W2^T
            pl.BlockSpec((1, D), lambda i: (0, 0)),             # b2
            pl.BlockSpec((1, D), lambda i: (0, 0)),             # ln2 gamma
            pl.BlockSpec((1, D), lambda i: (0, 0)),             # ln2 beta
        ],
        out_specs=pl.BlockSpec((B, L, D), lambda i: (0, 0, 0)),
        compiler_params=pltpu.CompilerParams(
            dimension_semantics=("arbitrary",)),
        cost_estimate=pl.CostEstimate(flops=flops, transcendentals=2 * B * L,
                                      bytes_accessed=bytes_accessed),
    )(x, a, bd, p["g1"], p["be1"], w1t, p["b1"], w2t, p["b2"], p["g2"], p["be2"])


def _final_norm_forward(x, g, b):
    B, L, D = x.shape
    dt = x.dtype
    return pl.pallas_call(
        _final_norm_kernel,
        out_shape=jax.ShapeDtypeStruct((B, L, D), dt),
        grid=(1,),
        in_specs=[
            pl.BlockSpec((B, L, D), lambda i: (0, 0, 0)),
            pl.BlockSpec((1, D), lambda i: (0, 0)),
            pl.BlockSpec((1, D), lambda i: (0, 0)),
        ],
        out_specs=pl.BlockSpec((B, L, D), lambda i: (0, 0, 0)),
        compiler_params=pltpu.CompilerParams(
            dimension_semantics=("arbitrary",)),
        cost_estimate=pl.CostEstimate(
            flops=10 * B * L * D, transcendentals=B * L,
            bytes_accessed=int(2 * B * L * D * x.dtype.itemsize + 8 * D)),
    )(x, g, b)


def fnet_encoder2_forward(x, layer_params, final_norm, attn_mask=None):
    """Pallas forward of FNetEncoder2: returns (encoded, None).

    attn_mask is accepted for API parity with the PyTorch module and ignored
    (FNet token mixing is mask-free, exactly like the reference)."""
    del attn_mask
    _, L, D = x.shape
    a_basis = _seq_basis(L)          # (2L, L)
    bd_basis = _hidden_basis(D)      # (2D, D)
    for p in layer_params:
        x = _fnet_layer_forward(x, a_basis, bd_basis, p)
    x = _final_norm_forward(x, final_norm["g"], final_norm["b"])
    return x, None


# ---------------------------------------------------------------------------
# Parameters, pure-JAX reference, and self-test
# ---------------------------------------------------------------------------
def _init_params(key, d_model, d_ff, e_layers):
    layers = []
    for _ in range(e_layers):
        key, k1, k2, k3, k4 = jax.random.split(key, 5)
        s1 = 1.0 / math.sqrt(d_model)
        s2 = 1.0 / math.sqrt(d_ff)
        layers.append(dict(
            w1=jax.random.uniform(k1, (d_ff, d_model), jnp.float32, -s1, s1),
            b1=jax.random.uniform(k2, (1, d_ff), jnp.float32, -s1, s1),
            w2=jax.random.uniform(k3, (d_model, d_ff), jnp.float32, -s2, s2),
            b2=jax.random.uniform(k4, (1, d_model), jnp.float32, -s2, s2),
            g1=jnp.ones((1, d_model), jnp.float32),
            be1=jnp.zeros((1, d_model), jnp.float32),
            g2=jnp.ones((1, d_model), jnp.float32),
            be2=jnp.zeros((1, d_model), jnp.float32),
        ))
    final = dict(g=jnp.ones((1, d_model), jnp.float32),
                 b=jnp.zeros((1, d_model), jnp.float32))
    return layers, final


def _reference_forward(x, layer_params, final_norm):
    """Pure-JAX reference with jnp.fft (same semantics as the torch module)."""
    def ln(v, g, b):
        mu = v.mean(-1, keepdims=True)
        var = ((v - mu) ** 2).mean(-1, keepdims=True)
        return (v - mu) / jnp.sqrt(var + _LN_EPS) * g + b

    x = x.astype(jnp.float32)
    for p in layer_params:
        new_x = jnp.real(jnp.fft.fft(jnp.fft.fft(x, axis=-1), axis=-2))
        x = ln(x + new_x, p["g1"][0], p["be1"][0])
        y = jnp.maximum(jnp.einsum("bld,fd->blf", x, p["w1"]) + p["b1"][0], 0.0)
        y = jnp.einsum("blf,df->bld", y, p["w2"]) + p["b2"][0]
        x = ln(x + y, p["g2"][0], p["be2"][0])
    return ln(x, final_norm["g"][0], final_norm["b"][0])


if __name__ == "__main__":
    B, L, D_MODEL, D_FF, E_LAYERS = 2, 8, 32, 64, 2

    key = jax.random.PRNGKey(0)
    key_x, key_p = jax.random.split(key)
    x = jax.random.normal(key_x, (B, L, D_MODEL), dtype=jnp.float32)
    layer_params, final_norm = _init_params(key_p, D_MODEL, D_FF, E_LAYERS)

    fwd = jax.jit(fnet_encoder2_forward)
    out, attn = fwd(x, layer_params, final_norm)
    out = jax.block_until_ready(out)

    ref = _reference_forward(x, layer_params, final_norm)
    assert out.shape == (B, L, D_MODEL)
    assert attn is None
    max_err = float(jnp.max(jnp.abs(out.astype(jnp.float32) - ref)))
    assert max_err < 2e-3, f"mismatch vs FFT reference: max err {max_err}"
    print("KERNEL_OK")
</pallas_src>

<mosaic_0001>
module attributes {stable_mosaic.version = 11 : i64} {
  func.func @_final_norm_kernel(%arg0: i32, %arg1: memref<2x8x32xf32, #tpu.memory_space<vmem>>, %arg2: memref<1x32xf32, #tpu.memory_space<vmem>>, %arg3: memref<1x32xf32, #tpu.memory_space<vmem>>, %arg4: memref<2x8x32xf32, #tpu.memory_space<vmem>>) attributes {dimension_semantics = [#tpu.dimension_semantics<arbitrary>], iteration_bounds = array<i64: 1>, scalar_prefetch = 0 : i64, scratch_operands = 0 : i64, tpu.core_type = #tpu.core_type<tc>, window_params = [{pipeline_mode = #tpu.pipeline_mode<synchronous>, transform_indices = @transform_0, window_bounds = array<i64: 2, 8, 32>}, {pipeline_mode = #tpu.pipeline_mode<synchronous>, transform_indices = @transform_1, window_bounds = array<i64: 1, 32>}, {pipeline_mode = #tpu.pipeline_mode<synchronous>, transform_indices = @transform_2, window_bounds = array<i64: 1, 32>}, {pipeline_mode = #tpu.pipeline_mode<synchronous>, transform_indices = @transform_3, window_bounds = array<i64: 2, 8, 32>}]} {
    %c0 = arith.constant 0 : index
    %c0_0 = arith.constant 0 : index
    %c0_1 = arith.constant 0 : index
    %0 = vector.load %arg1[%c0, %c0_0, %c0_1] : memref<2x8x32xf32, #tpu.memory_space<vmem>>, vector<2x8x32xf32>
    %1 = vector.shape_cast %0 : vector<2x8x32xf32> to vector<16x32xf32>
    %c0_2 = arith.constant 0 : index
    %c0_3 = arith.constant 0 : index
    %2 = vector.load %arg2[%c0_2, %c0_3] : memref<1x32xf32, #tpu.memory_space<vmem>>, vector<1x32xf32>
    %c0_4 = arith.constant 0 : index
    %c0_5 = arith.constant 0 : index
    %3 = vector.load %arg3[%c0_4, %c0_5] : memref<1x32xf32, #tpu.memory_space<vmem>>, vector<1x32xf32>
    %cst = arith.constant dense<0.000000e+00> : vector<16xf32>
    %4 = vector.multi_reduction <add>, %1, %cst [1] : vector<16x32xf32> to vector<16xf32>
    %5 = vector.shape_cast %4 : vector<16xf32> to vector<16x1xf32>
    %cst_6 = arith.constant 3.200000e+01 : f32
    %6 = vector.broadcast %cst_6 : f32 to vector<16x1xf32>
    %7 = arith.divf %5, %6 : vector<16x1xf32>
    %8 = vector.broadcast %7 : vector<16x1xf32> to vector<16x32xf32>
    %9 = arith.subf %1, %8 : vector<16x32xf32>
    %10 = arith.mulf %9, %9 : vector<16x32xf32>
    %cst_7 = arith.constant dense<0.000000e+00> : vector<16xf32>
    %11 = vector.multi_reduction <add>, %10, %cst_7 [1] : vector<16x32xf32> to vector<16xf32>
    %12 = vector.shape_cast %11 : vector<16xf32> to vector<16x1xf32>
    %cst_8 = arith.constant 3.200000e+01 : f32
    %13 = vector.broadcast %cst_8 : f32 to vector<16x1xf32>
    %14 = arith.divf %12, %13 : vector<16x1xf32>
    %cst_9 = arith.constant 9.99999974E-6 : f32
    %15 = vector.broadcast %cst_9 : f32 to vector<16x1xf32>
    %16 = arith.addf %14, %15 : vector<16x1xf32>
    %17 = math.rsqrt %16 : vector<16x1xf32>
    %18 = vector.broadcast %17 : vector<16x1xf32> to vector<16x32xf32>
    %19 = arith.mulf %9, %18 : vector<16x32xf32>
    %20 = vector.broadcast %2 : vector<1x32xf32> to vector<16x32xf32>
    %21 = arith.mulf %19, %20 : vector<16x32xf32>
    %22 = vector.broadcast %3 : vector<1x32xf32> to vector<16x32xf32>
    %23 = arith.addf %21, %22 : vector<16x32xf32>
    %24 = vector.shape_cast %23 : vector<16x32xf32> to vector<2x8x32xf32>
    %c0_10 = arith.constant 0 : index
    %c0_11 = arith.constant 0 : index
    %c0_12 = arith.constant 0 : index
    %25 = vector.load %arg4[%c0_10, %c0_11, %c0_12] : memref<2x8x32xf32, #tpu.memory_space<vmem>>, vector<2x8x32xf32>
    tpu.vector_store %arg4[%c0_10, %c0_11, %c0_12], %24 {strides = array<i32>} : memref<2x8x32xf32, #tpu.memory_space<vmem>>, vector<2x8x32xf32>,
    return
  }
  func.func @transform_0(%arg0: i32) -> (i32, i32, i32) {
    %c0_i32 = arith.constant 0 : i32
    %c0_i32_0 = arith.constant 0 : i32
    %c0_i32_1 = arith.constant 0 : i32
    %c0_i32_2 = arith.constant 0 : i32
    return %c0_i32, %c0_i32_0, %c0_i32_1 : i32, i32, i32
  }
  func.func @transform_1(%arg0: i32) -> (i32, i32) {
    %c0_i32 = arith.constant 0 : i32
    %c0_i32_0 = arith.constant 0 : i32
    %c0_i32_1 = arith.constant 0 : i32
    return %c0_i32, %c0_i32_0 : i32, i32
  }
  func.func @transform_2(%arg0: i32) -> (i32, i32) {
    %c0_i32 = arith.constant 0 : i32
    %c0_i32_0 = arith.constant 0 : i32
    %c0_i32_1 = arith.constant 0 : i32
    return %c0_i32, %c0_i32_0 : i32, i32
  }
  func.func @transform_3(%arg0: i32) -> (i32, i32, i32) {
    %c0_i32 = arith.constant 0 : i32
    %c0_i32_0 = arith.constant 0 : i32
    %c0_i32_1 = arith.constant 0 : i32
    %c0_i32_2 = arith.constant 0 : i32
    return %c0_i32, %c0_i32_0, %c0_i32_1 : i32, i32, i32
  }
}

module attributes {stable_mosaic.version = 11 : i64} {
  func.func @_fnet_layer_kernel(%arg0: i32, %arg1: memref<2x8x32xf32, #tpu.memory_space<vmem>>, %arg2: memref<16x8xf32, #tpu.memory_space<vmem>>, %arg3: memref<64x32xf32, #tpu.memory_space<vmem>>, %arg4: memref<1x32xf32, #tpu.memory_space<vmem>>, %arg5: memref<1x32xf32, #tpu.memory_space<vmem>>, %arg6: memref<32x64xf32, #tpu.memory_space<vmem>>, %arg7: memref<1x64xf32, #tpu.memory_space<vmem>>, %arg8: memref<64x32xf32, #tpu.memory_space<vmem>>, %arg9: memref<1x32xf32, #tpu.memory_space<vmem>>, %arg10: memref<1x32xf32, #tpu.memory_space<vmem>>, %arg11: memref<1x32xf32, #tpu.memory_space<vmem>>, %arg12: memref<2x8x32xf32, #tpu.memory_space<vmem>>) attributes {dimension_semantics = [#tpu.dimension_semantics<arbitrary>], iteration_bounds = array<i64: 1>, scalar_prefetch = 0 : i64, scratch_operands = 0 : i64, tpu.core_type = #tpu.core_type<tc>, window_params = [{pipeline_mode = #tpu.pipeline_mode<synchronous>, transform_indices = @transform_0, window_bounds = array<i64: 2, 8, 32>}, {pipeline_mode = #tpu.pipeline_mode<synchronous>, transform_indices = @transform_1, window_bounds = array<i64: 16, 8>}, {pipeline_mode = #tpu.pipeline_mode<synchronous>, transform_indices = @transform_2, window_bounds = array<i64: 64, 32>}, {pipeline_mode = #tpu.pipeline_mode<synchronous>, transform_indices = @transform_3, window_bounds = array<i64: 1, 32>}, {pipeline_mode = #tpu.pipeline_mode<synchronous>, transform_indices = @transform_4, window_bounds = array<i64: 1, 32>}, {pipeline_mode = #tpu.pipeline_mode<synchronous>, transform_indices = @transform_5, window_bounds = array<i64: 32, 64>}, {pipeline_mode = #tpu.pipeline_mode<synchronous>, transform_indices = @transform_6, window_bounds = array<i64: 1, 64>}, {pipeline_mode = #tpu.pipeline_mode<synchronous>, transform_indices = @transform_7, window_bounds = array<i64: 64, 32>}, {pipeline_mode = #tpu.pipeline_mode<synchronous>, transform_indices = @transform_8, window_bounds = array<i64: 1, 32>}, {pipeline_mode = #tpu.pipeline_mode<synchronous>, transform_indices = @transform_9, window_bounds = array<i64: 1, 32>}, {pipeline_mode = #tpu.pipeline_mode<synchronous>, transform_indices = @transform_10, window_bounds = array<i64: 1, 32>}, {pipeline_mode = #tpu.pipeline_mode<synchronous>, transform_indices = @transform_11, window_bounds = array<i64: 2, 8, 32>}]} {
    %c0 = arith.constant 0 : index
    %c0_0 = arith.constant 0 : index
    %c0_1 = arith.constant 0 : index
    %0 = vector.load %arg1[%c0, %c0_0, %c0_1] : memref<2x8x32xf32, #tpu.memory_space<vmem>>, vector<2x8x32xf32>
    %c0_2 = arith.constant 0 : index
    %c0_3 = arith.constant 0 : index
    %1 = vector.load %arg2[%c0_2, %c0_3] : memref<16x8xf32, #tpu.memory_space<vmem>>, vector<16x8xf32>
    %2 = vector.shape_cast %1 : vector<16x8xf32> to vector<1x16x8xf32>
    %3 = vector.broadcast %2 : vector<1x16x8xf32> to vector<2x16x8xf32>
    %cst = arith.constant dense<0.000000e+00> : vector<2x16x32xf32>
    %4 = tpu.matmul %3, %0, %cst {dimension_numbers = #tpu.dot_dimension_numbers<[2], [1], [1], [2], [0, 0, 0, 1, 1, 2], [0], [0]>} : vector<2x16x8xf32>, vector<2x8x32xf32>, vector<2x16x32xf32> -> vector<2x16x32xf32>
    %5 = vector.extract_strided_slice %4 {offsets = [0, 0, 0], sizes = [2, 8, 32], strides = [1, 1, 1]} : vector<2x16x32xf32> to vector<2x8x32xf32>
    %6 = vector.extract_strided_slice %4 {offsets = [0, 8, 0], sizes = [2, 8, 32], strides = [1, 1, 1]} : vector<2x16x32xf32> to vector<2x8x32xf32>
    %7 = tpu.concatenate %5, %6 in 2 : vector<2x8x32xf32>, vector<2x8x32xf32> -> vector<2x8x64xf32>
    %8 = vector.shape_cast %7 : vector<2x8x64xf32> to vector<16x64xf32>
    %c0_4 = arith.constant 0 : index
    %c0_5 = arith.constant 0 : index
    %9 = vector.load %arg3[%c0_4, %c0_5] : memref<64x32xf32, #tpu.memory_space<vmem>>, vector<64x32xf32>
    %cst_6 = arith.constant dense<0.000000e+00> : vector<16x32xf32>
    %10 = tpu.matmul %8, %9, %cst_6 {dimension_numbers = #tpu.dot_dimension_numbers<[1], [0], [0], [1], [0, 0, 1, 1], [], []>} : vector<16x64xf32>, vector<64x32xf32>, vector<16x32xf32> -> vector<16x32xf32>
    %11 = vector.shape_cast %0 : vector<2x8x32xf32> to vector<16x32xf32>
    %12 = arith.addf %11, %10 : vector<16x32xf32>
    %c0_7 = arith.constant 0 : index
    %c0_8 = arith.constant 0 : index
    %13 = vector.load %arg4[%c0_7, %c0_8] : memref<1x32xf32, #tpu.memory_space<vmem>>, vector<1x32xf32>
    %c0_9 = arith.constant 0 : index
    %c0_10 = arith.constant 0 : index
    %14 = vector.load %arg5[%c0_9, %c0_10] : memref<1x32xf32, #tpu.memory_space<vmem>>, vector<1x32xf32>
    %cst_11 = arith.constant dense<0.000000e+00> : vector<16xf32>
    %15 = vector.multi_reduction <add>, %12, %cst_11 [1] : vector<16x32xf32> to vector<16xf32>
    %16 = vector.shape_cast %15 : vector<16xf32> to vector<16x1xf32>
    %cst_12 = arith.constant 3.200000e+01 : f32
    %17 = vector.broadcast %cst_12 : f32 to vector<16x1xf32>
    %18 = arith.divf %16, %17 : vector<16x1xf32>
    %19 = vector.broadcast %18 : vector<16x1xf32> to vector<16x32xf32>
    %20 = arith.subf %12, %19 : vector<16x32xf32>
    %21 = arith.mulf %20, %20 : vector<16x32xf32>
    %cst_13 = arith.constant dense<0.000000e+00> : vector<16xf32>
    %22 = vector.multi_reduction <add>, %21, %cst_13 [1] : vector<16x32xf32> to vector<16xf32>
    %23 = vector.shape_cast %22 : vector<16xf32> to vector<16x1xf32>
    %cst_14 = arith.constant 3.200000e+01 : f32
    %24 = vector.broadcast %cst_14 : f32 to vector<16x1xf32>
    %25 = arith.divf %23, %24 : vector<16x1xf32>
    %cst_15 = arith.constant 9.99999974E-6 : f32
    %26 = vector.broadcast %cst_15 : f32 to vector<16x1xf32>
    %27 = arith.addf %25, %26 : vector<16x1xf32>
    %28 = math.rsqrt %27 : vector<16x1xf32>
    %29 = vector.broadcast %28 : vector<16x1xf32> to vector<16x32xf32>
    %30 = arith.mulf %20, %29 : vector<16x32xf32>
    %31 = vector.broadcast %13 : vector<1x32xf32> to vector<16x32xf32>
    %32 = arith.mulf %30, %31 : vector<16x32xf32>
    %33 = vector.broadcast %14 : vector<1x32xf32> to vector<16x32xf32>
    %34 = arith.addf %32, %33 : vector<16x32xf32>
    %c0_16 = arith.constant 0 : index
    %c0_17 = arith.constant 0 : index
    %35 = vector.load %arg6[%c0_16, %c0_17] : memref<32x64xf32, #tpu.memory_space<vmem>>, vector<32x64xf32>
    %cst_18 = arith.constant dense<0.000000e+00> : vector<16x64xf32>
    %36 = tpu.matmul %34, %35, %cst_18 {dimension_numbers = #tpu.dot_dimension_numbers<[1], [0], [0], [1], [0, 0, 1, 1], [], []>} : vector<16x32xf32>, vector<32x64xf32>, vector<16x64xf32> -> vector<16x64xf32>
    %c0_19 = arith.constant 0 : index
    %c0_20 = arith.constant 0 : index
    %37 = vector.load %arg7[%c0_19, %c0_20] : memref<1x64xf32, #tpu.memory_space<vmem>>, vector<1x64xf32>
    %38 = vector.broadcast %37 : vector<1x64xf32> to vector<16x64xf32>
    %39 = arith.addf %36, %38 : vector<16x64xf32>
    %cst_21 = arith.constant 0.000000e+00 : f32
    %40 = vector.broadcast %cst_21 : f32 to vector<16x64xf32>
    %41 = arith.maximumf %39, %40 : vector<16x64xf32>
    %c0_22 = arith.constant 0 : index
    %c0_23 = arith.constant 0 : index
    %42 = vector.load %arg8[%c0_22, %c0_23] : memref<64x32xf32, #tpu.memory_space<vmem>>, vector<64x32xf32>
    %cst_24 = arith.constant dense<0.000000e+00> : vector<16x32xf32>
    %43 = tpu.matmul %41, %42, %cst_24 {dimension_numbers = #tpu.dot_dimension_numbers<[1], [0], [0], [1], [0, 0, 1, 1], [], []>} : vector<16x64xf32>, vector<64x32xf32>, vector<16x32xf32> -> vector<16x32xf32>
    %c0_25 = arith.constant 0 : index
    %c0_26 = arith.constant 0 : index
    %44 = vector.load %arg9[%c0_25, %c0_26] : memref<1x32xf32, #tpu.memory_space<vmem>>, vector<1x32xf32>
    %45 = vector.broadcast %44 : vector<1x32xf32> to vector<16x32xf32>
    %46 = arith.addf %43, %45 : vector<16x32xf32>
    %47 = arith.addf %34, %46 : vector<16x32xf32>
    %c0_27 = arith.constant 0 : index
    %c0_28 = arith.constant 0 : index
    %48 = vector.load %arg10[%c0_27, %c0_28] : memref<1x32xf32, #tpu.memory_space<vmem>>, vector<1x32xf32>
    %c0_29 = arith.constant 0 : index
    %c0_30 = arith.constant 0 : index
    %49 = vector.load %arg11[%c0_29, %c0_30] : memref<1x32xf32, #tpu.memory_space<vmem>>, vector<1x32xf32>
    %cst_31 = arith.constant dense<0.000000e+00> : vector<16xf32>
    %50 = vector.multi_reduction <add>, %47, %cst_31 [1] : vector<16x32xf32> to vector<16xf32>
    %51 = vector.shape_cast %50 : vector<16xf32> to vector<16x1xf32>
    %cst_32 = arith.constant 3.200000e+01 : f32
    %52 = vector.broadcast %cst_32 : f32 to vector<16x1xf32>
    %53 = arith.divf %51, %52 : vector<16x1xf32>
    %54 = vector.broadcast %53 : vector<16x1xf32> to vector<16x32xf32>
    %55 = arith.subf %47, %54 : vector<16x32xf32>
    %56 = arith.mulf %55, %55 : vector<16x32xf32>
    %cst_33 = arith.constant dense<0.000000e+00> : vector<16xf32>
    %57 = vector.multi_reduction <add>, %56, %cst_33 [1] : vector<16x32xf32> to vector<16xf32>
    %58 = vector.shape_cast %57 : vector<16xf32> to vector<16x1xf32>
    %cst_34 = arith.constant 3.200000e+01 : f32
    %59 = vector.broadcast %cst_34 : f32 to vector<16x1xf32>
    %60 = arith.divf %58, %59 : vector<16x1xf32>
    %cst_35 = arith.constant 9.99999974E-6 : f32
    %61 = vector.broadcast %cst_35 : f32 to vector<16x1xf32>
    %62 = arith.addf %60, %61 : vector<16x1xf32>
    %63 = math.rsqrt %62 : vector<16x1xf32>
    %64 = vector.broadcast %63 : vector<16x1xf32> to vector<16x32xf32>
    %65 = arith.mulf %55, %64 : vector<16x32xf32>
    %66 = vector.broadcast %48 : vector<1x32xf32> to vector<16x32xf32>
    %67 = arith.mulf %65, %66 : vector<16x32xf32>
    %68 = vector.broadcast %49 : vector<1x32xf32> to vector<16x32xf32>
    %69 = arith.addf %67, %68 : vector<16x32xf32>
    %70 = vector.shape_cast %69 : vector<16x32xf32> to vector<2x8x32xf32>
    %c0_36 = arith.constant 0 : index
    %c0_37 = arith.constant 0 : index
    %c0_38 = arith.constant 0 : index
    %71 = vector.load %arg12[%c0_36, %c0_37, %c0_38] : memref<2x8x32xf32, #tpu.memory_space<vmem>>, vector<2x8x32xf32>
    tpu.vector_store %arg12[%c0_36, %c0_37, %c0_38], %70 {strides = array<i32>} : memref<2x8x32xf32, #tpu.memory_space<vmem>>, vector<2x8x32xf32>,
    return
  }
  func.func @transform_0(%arg0: i32) -> (i32, i32, i32) {
    %c0_i32 = arith.constant 0 : i32
    %c0_i32_0 = arith.constant 0 : i32
    %c0_i32_1 = arith.constant 0 : i32
    %c0_i32_2 = arith.constant 0 : i32
    return %c0_i32, %c0_i32_0, %c0_i32_1 : i32, i32, i32
  }
  func.func @transform_1(%arg0: i32) -> (i32, i32) {
    %c0_i32 = arith.constant 0 : i32
    %c0_i32_0 = arith.constant 0 : i32
    %c0_i32_1 = arith.constant 0 : i32
    return %c0_i32, %c0_i32_0 : i32, i32
  }
  func.func @transform_2(%arg0: i32) -> (i32, i32) {
    %c0_i32 = arith.constant 0 : i32
    %c0_i32_0 = arith.constant 0 : i32
    %c0_i32_1 = arith.constant 0 : i32
    return %c0_i32, %c0_i32_0 : i32, i32
  }
  func.func @transform_3(%arg0: i32) -> (i32, i32) {
    %c0_i32 = arith.constant 0 : i32
    %c0_i32_0 = arith.constant 0 : i32
    %c0_i32_1 = arith.constant 0 : i32
    return %c0_i32, %c0_i32_0 : i32, i32
  }
  func.func @transform_4(%arg0: i32) -> (i32, i32) {
    %c0_i32 = arith.constant 0 : i32
    %c0_i32_0 = arith.constant 0 : i32
    %c0_i32_1 = arith.constant 0 : i32
    return %c0_i32, %c0_i32_0 : i32, i32
  }
  func.func @transform_5(%arg0: i32) -> (i32, i32) {
    %c0_i32 = arith.constant 0 : i32
    %c0_i32_0 = arith.constant 0 : i32
    %c0_i32_1 = arith.constant 0 : i32
    return %c0_i32, %c0_i32_0 : i32, i32
  }
  func.func @transform_6(%arg0: i32) -> (i32, i32) {
    %c0_i32 = arith.constant 0 : i32
    %c0_i32_0 = arith.constant 0 : i32
    %c0_i32_1 = arith.constant 0 : i32
    return %c0_i32, %c0_i32_0 : i32, i32
  }
  func.func @transform_7(%arg0: i32) -> (i32, i32) {
    %c0_i32 = arith.constant 0 : i32
    %c0_i32_0 = arith.constant 0 : i32
    %c0_i32_1 = arith.constant 0 : i32
    return %c0_i32, %c0_i32_0 : i32, i32
  }
  func.func @transform_8(%arg0: i32) -> (i32, i32) {
    %c0_i32 = arith.constant 0 : i32
    %c0_i32_0 = arith.constant 0 : i32
    %c0_i32_1 = arith.constant 0 : i32
    return %c0_i32, %c0_i32_0 : i32, i32
  }
  func.func @transform_9(%arg0: i32) -> (i32, i32) {
    %c0_i32 = arith.constant 0 : i32
    %c0_i32_0 = arith.constant 0 : i32
    %c0_i32_1 = arith.constant 0 : i32
    return %c0_i32, %c0_i32_0 : i32, i32
  }
  func.func @transform_10(%arg0: i32) -> (i32, i32) {
    %c0_i32 = arith.constant 0 : i32
    %c0_i32_0 = arith.constant 0 : i32
    %c0_i32_1 = arith.constant 0 : i32
    return %c0_i32, %c0_i32_0 : i32, i32
  }
  func.func @transform_11(%arg0: i32) -> (i32, i32, i32) {
    %c0_i32 = arith.constant 0 : i32
    %c0_i32_0 = arith.constant 0 : i32
    %c0_i32_1 = arith.constant 0 : i32
    %c0_i32_2 = arith.constant 0 : i32
    return %c0_i32, %c0_i32_0, %c0_i32_1 : i32, i32, i32
  }
}

</mosaic_0001>

<bundles_post_ra>
// kernel: fnet_encoder2_forward.5
= control target key start
LH: loop header
LB: loop body
LE: loop exit
PB: predicated region body
PF: predicated region fallthrough
CT: control target
= control target key end

     0   :  { %vm19_vm0 = vcmask 261120   ;;  %s167_s0 = inlined_call_operand.vmem [shape: f32[2,8,32], index: 0, kind: input, shape index: {}]   ;;  %s168_s1 = inlined_call_operand.vmem [shape: f32[1,32], index: 1, kind: input, shape index: {}]   ;;  %s169_s2 = inlined_call_operand.vmem [shape: f32[1,32], index: 2, kind: input, shape index: {}]   ;;  %s170_s3 = inlined_call_operand.hbm [shape: f32[2,8,32], index: 3, kind: output, shape index: {}]  }
   0x1   :  { %v15_v0 = vld [vmem:[%s167_s0] sm:$0xff]  ;;  %v16_v1 = vld [vmem:[%s167_s0 + $0x8] sm:$0xff] }
   0x2   :  { %8 = vsyncpa [#allocation3], 0  ;;  %v20_v2 = vsel %vm19_vm0, %v15_v0, 0.0  ;;  %v23_v3 = vsel %vm19_vm0, %v16_v1, 0.0  ;;  %v81_v21 = vld [vmem:[%s168_s1] ss:$0 sm:$0xff] }
   0x3   :  { %21 = vadd.xlane.f32.xlu0 %v20_v2  ;;  %v82_v23 = vld [vmem:[%s169_s2] ss:$0 sm:$0xff]  ;;  %s114_s19 = smov [#allocation2]  }
   0x4   :  { %s70_s20 = sshll.u32 %s114_s19, 4  ;;  %s71_s20 = int_to_ptr.vmem [resolvable:$true] %s70_s20 }
   0x5   :  { %s90_s21 = scalar_lea.vmem %s71_s20, 256  ;;  %p95_p1 = scmp.lt.s32.totalorder %s71_s20, %s71_s20 }
   0x6   :  { %p91_p0 = scmp.ne.s32.totalorder %s71_s20, %s90_s21  ;;  %p96_p2 = scmp.lt.s32.totalorder %s90_s21, %s90_s21 }
   0x7   :  { %24 = vadd.xlane.f32.xlu0 %v23_v3 }
   0x8   :  { %p97_p3 = por %p96_p2, %p95_p1 }
   0xa   :  { %p98_p4 = pnand %p97_p3, %p91_p0 }
  0x90   :  { %v22_v4 = vpop.xlane.xlu0 %21 }
  0x91   :  { %v27_v5 = vmul.f32 0.03125, %v22_v4 }
  0x93   :  { %v29_v6 = vsub.f32 %v15_v0, %v27_v5 }
  0x94   :  { %v25_v7 = vpop.xlane.xlu0 %24 }
  0x95   :  { %v28_v8 = vmul.f32 0.03125, %v25_v7  ;;  %v31_v9 = vmul.f32 %v29_v6, %v29_v6 }
  0x97   :  { %v30_v10 = vsub.f32 %v16_v1, %v28_v8  ;;  %v33_v11 = vsel %vm19_vm0, %v31_v9, 0.0 }
  0x98   :  { %34 = vadd.xlane.f32.xlu1 %v33_v11 }
  0x99   :  { %v32_v12 = vmul.f32 %v30_v10, %v30_v10 }
  0x9b   :  { %v36_v13 = vsel %vm19_vm0, %v32_v12, 0.0 }
  0x9c   :  { %37 = vadd.xlane.f32.xlu1 %v36_v13 }
 0x125   :  { %v35_v14 = vpop.xlane.xlu1 %34 }
 0x126   :  { %v39_v15 = vmul.f32 0.03125, %v35_v14 }
 0x128   :  { %v41_v16 = vadd.f32 1e-05, %v39_v15 }
 0x129   :  { %v38_v17 = vpop.xlane.xlu1 %37 }
 0x12a   :  { %86 = vrsqrt.f32 %v41_v16  ;;  %v40_v18 = vmul.f32 0.03125, %v38_v17 }
 0x12c   :  { %v42_v19 = vadd.f32 1e-05, %v40_v18 }
 0x12e   :  { %88 = vrsqrt.f32 %v42_v19 }
 0x134   :  { %v87_v20 = vpop.eup %86 }
 0x135   :  { %v45_v22 = vmul.f32 %v87_v20, %v29_v6 }
 0x137   :  { %v53_v24 = vmul.f32 %v81_v21, %v45_v22 }
 0x138   :  { %v89_v25 = vpop.eup %88 }
 0x139   :  { %v46_v26 = vmul.f32 %v89_v25, %v30_v10  ;;  %v61_v27 = vadd.f32 %v82_v23, %v53_v24 }
 0x13b   :  { %v54_v28 = vmul.f32 %v81_v21, %v46_v26  ;;  %63 = vst.msk [vmem:[#allocation2] sm:$0xff] %vm19_vm0, %v61_v27 }
 0x13d   :  { %v62_v29 = vadd.f32 %v82_v23, %v54_v28 }
 0x13f   :  { %64 = vst.msk [vmem:[#allocation2 + $0x8] sm:$0xff] %vm19_vm0, %v62_v29 }
 0x140   :  { %101 = shalt.err (!%p98_p4)
}
 0x141   :  { %s102_s22 = scalar_lea.hbm %s170_s3, 256 }
 0x142   :  { %p103_p5 = scmp.ne.s32.totalorder %s170_s3, %s102_s22  ;;  %p106_p6 = scmp.lt.u32.totalorder %s102_s22, %s170_s3 }
 0x144   :  { %p108_p7 = pnand %p106_p6, %p103_p5 }
 0x146   :  { %111 = shalt.err (!%p108_p7)
}
 0x147   :  { %s115_s27 = smov 128   ;;  %s116_s28 = smov 8  }
 0x148   :  { %76 = dma.vmem_to_hbm [thread:$0]  %s71_s20, 256, %s170_s3, [#allocation3], %s115_s27, %s115_s27, %s116_s28  }
 0x149   :  { %112 = dma.done.wait [#allocation3], 256  }
 0x14a   :  { %113 = vsyncadd [#allocation3], 4294967040 }
 0x14b   :  { %80 = vsyncpa [#allocation3], 1 }

// kernel: fnet_encoder2_forward.3
= control target key start
LH: loop header
LB: loop body
LE: loop exit
PB: predicated region body
PF: predicated region fallthrough
CT: control target
= control target key end

     0   :  { %vm42_vm0 = vcmask 64512   ;;  %s745_s20 = smov 32   ;;  %vm207_vm1 = vcmask 261120   ;;  %vm218_vm2 = vcmask 523264   ;;  %s920_s0 = inlined_call_operand.vmem [shape: f32[2,8,32], index: 0, kind: input, shape index: {}]   ;;  %s921_s1 = inlined_call_operand.vmem [shape: f32[16,8], index: 1, kind: input, shape index: {}]   ;;  %s922_s2 = inlined_call_operand.vmem [shape: f32[64,32], index: 2, kind: input, shape index: {}]   ;;  %s923_s5 = inlined_call_operand.vmem [shape: f32[32,64], index: 5, kind: input, shape index: {}]   ;;  %s924_s7 = inlined_call_operand.vmem [shape: f32[64,32], index: 7, kind: input, shape index: {}]   ;;  %s925_s3 = inlined_call_operand.vmem [shape: f32[1,32], index: 3, kind: input, shape index: {}]   ;;  %s926_s4 = inlined_call_operand.vmem [shape: f32[1,32], index: 4, kind: input, shape index: {}]   ;;  %s927_s6 = inlined_call_operand.vmem [shape: f32[1,64], index: 6, kind: input, shape index: {}]   ;;  %s928_s8 = inlined_call_operand.vmem [shape: f32[1,32], index: 8, kind: input, shape index: {}]   ;;  %s929_s9 = inlined_call_operand.vmem [shape: f32[1,32], index: 9, kind: input, shape index: {}]   ;;  %s930_s10 = inlined_call_operand.vmem [shape: f32[1,32], index: 10, kind: input, shape index: {}]   ;;  %s931_s11 = inlined_call_operand.vmem [shape: f32[2,8,32], index: 11, kind: output, shape index: {}]  }
   0x1   :  { %v38_v0 = vld [vmem:[%s920_s0] sm:$0xff]  ;;  %v41_v2 = vld [vmem:[%s921_s1 + $0x8] sm:$0xff]  ;;  %v212_v6 = vld [vmem:[%s922_s2 + $0x10] sm:$0xff] }
   0x2   :  { %v40_v1 = vld [vmem:[%s921_s1] sm:$0xff]  ;;  %637 = vmatprep.subr.mxu0 %v38_v0  ;;  %v39_v3 = vld [vmem:[%s920_s0 + $0x8] sm:$0xff]  ;;  %v213_v8 = vld [vmem:[%s922_s2 + $0x18] sm:$0xff] }
   0x3   :  { %639 = vmatprep.mubr.msk.f32.mxu0 %vm42_vm0, %v40_v1  ;;  %638 = vmatpush3.msra.mxu0 %v38_v0  ;;  %v210_v4 = vld [vmem:[%s922_s2] sm:$0xff]  ;;  %v211_v5 = vld [vmem:[%s922_s2 + $0x8] sm:$0xff]  ;;  %v700_v9 = vpack.c.bf16 %v213_v8, %v212_v6  ;;  %v216_v13 = vld [vmem:[%s922_s2 + $0x30] sm:$0xff] }
   0x4   :  { %640 = vmatmul.mubr.msk.f32.vlgmr.msra.gmra.mrb[0].mxu0 %vm42_vm0, %v41_v2  ;;  %642 = vmatprep.subr.mxu0 %v39_v3  ;;  %v696_v7 = vpack.c.bf16 %v211_v5, %v210_v4  ;;  %v214_v10 = vld [vmem:[%s922_s2 + $0x20] sm:$0xff]  ;;  %v215_v11 = vld [vmem:[%s922_s2 + $0x28] sm:$0xff]  ;;  %v217_v14 = vld [vmem:[%s922_s2 + $0x38] sm:$0xff] }
   0x5   :  { %643 = vmatpush3.msra.mxu0 %v39_v3  ;;  %644 = vmatprep.mubr.msk.f32.mxu0 %vm42_vm0, %v40_v1  ;;  %v704_v12 = vpack.c.bf16 %v215_v11, %v214_v10  ;;  %v708_v15 = vpack.c.bf16 %v217_v14, %v216_v13  ;;  %v347_v40 = vld [vmem:[%s923_s5] sm:$0xff]  ;;  %v348_v41 = vld [vmem:[%s923_s5 + $0x8] sm:$0xff]  ;;  %v349_v42 = vld [vmem:[%s923_s5 + $0x10] sm:$0xff] }
   0x6   :  { %697 = vmatprep.subr.bf16.mxu0 %v696_v7  ;;  %v712_v43 = vpack.c.bf16 %v348_v41, %v347_v40  ;;  %v350_v44 = vld [vmem:[%s923_s5 + $0x18] sm:$0xff]  ;;  %v441_v46 = vld [vmem:[%s924_s7] sm:$0xff]  ;;  %v442_v47 = vld [vmem:[%s924_s7 + $0x8] sm:$0xff] }
   0x7   :  { %v716_v45 = vpack.c.bf16 %v350_v44, %v349_v42  ;;  %v720_v48 = vpack.c.bf16 %v442_v47, %v441_v46  ;;  %v595_v56 = vld [vmem:[%s925_s3] ss:$0 sm:$0xff]  ;;  %v443_v63 = vld [vmem:[%s924_s7 + $0x10] sm:$0xff]  ;;  %v446_v5 = vld [vmem:[%s924_s7 + $0x28] sm:$0xff] }
   0x8   :  { %645 = vmatmul.mubr.msk.f32.vlgmr.msra.gmra.mrb[2].mxu0 %vm42_vm0, %v41_v2  ;;  %713 = vmatprep.subr.bf16.mxu1 %v712_v43  ;;  %v596_v58 = vld [vmem:[%s926_s4] ss:$0 sm:$0xff]  ;;  %v448_v8 = vld [vmem:[%s924_s7 + $0x38] sm:$0xff] }
   0x9   :  { %699 = vmatpush3.bf16.msra.mxu0 %v696_v7  ;;  %715 = vmatpush3.bf16.msra.mxu1 %v712_v43  ;;  %v445_v4 = vld [vmem:[%s924_s7 + $0x20] sm:$0xff]  ;;  %v447_v7 = vld [vmem:[%s924_s7 + $0x30] sm:$0xff] }
   0xa   :  { %701 = vmatprep.subr.bf16.mxu0 %v700_v9  ;;  %717 = vmatprep.subr.bf16.mxu1 %v716_v45  ;;  %v728_v6 = vpack.c.bf16 %v446_v5, %v445_v4  ;;  %v597_v10 = vld [vmem:[%s927_s6] ss:$0 sm:$0xff] }
   0xb   :  { %v603_v43 = vld [vmem:[%s929_s9] ss:$0 sm:$0xff] }
   0xd   :  { %703 = vmatpush3.bf16.msra.mxu0 %v700_v9  ;;  %719 = vmatpush3.bf16.msra.mxu1 %v716_v45  ;;  %v732_v9 = vpack.c.bf16 %v448_v8, %v447_v7  ;;  %v604_v45 = vld [vmem:[%s930_s10] ss:$0 sm:$0xff] }
   0xe   :  { %705 = vmatprep.subr.bf16.mxu0 %v704_v12  ;;  %721 = vmatprep.subr.bf16.mxu1 %v720_v48 }
  0x11   :  { %707 = vmatpush3.bf16.msra.mxu0 %v704_v12 }
  0x12   :  { %709 = vmatprep.subr.bf16.mxu0 %v708_v15 }
  0x15   :  { %711 = vmatpush3.bf16.msra.mxu0 %v708_v15 }
  0xd7   :  { %v641_v16 = vpop.f32.mrb[0].mxu0 }
  0xd8   :  { %201 = vrot.lane.b32.xlu0 %v641_v16, %s745_s20  ;;  %v115_v17 = vpop.f32.mrb[1].mxu0 }
  0xdb   :  { %v646_v18 = vpop.f32.mrb[2].mxu0 }
  0xdc   :  { %203 = vrot.lane.b32.xlu0 %v646_v18, %s745_s20  ;;  %v190_v19 = vpop.f32.mrb[3].mxu0 }
 0x14a   :  { %v202_v20 = vpop.permute.xlu0 %201 }
 0x14b   :  { %v208_v21 = vsel %vm207_vm1, %v115_v17, %v202_v20  ;;  %v600_v17 = vld [vmem:[%s928_s8] ss:$0 sm:$0xff] }
 0x14c   :  { %663 = vmatprep.mubr.msk.f32.mxu0 %vm218_vm2, %v208_v21 }
 0x14e   :  { %v204_v22 = vpop.permute.xlu0 %203 }
 0x14f   :  { %v209_v23 = vsel %vm207_vm1, %v190_v19, %v204_v22 }
 0x150   :  { %664 = vmatmul.mubr.msk.f32.vlgmr.msra.gmra.mrb[4].mxu0 %vm218_vm2, %v209_v23 }
 0x223   :  { %v665_v24 = vpop.f32.mrb[4].mxu0 }
 0x224   :  { %v291_v25 = vpop.f32.mrb[5].mxu0  ;;  %v301_v27 = vadd.f32 %v665_v24, %v39_v3 }
 0x225   :  { %v300_v26 = vadd.f32 %v291_v25, %v38_v0  ;;  %v444_v0 = vld [vmem:[%s924_s7 + $0x18] sm:$0xff] }
 0x226   :  { %v307_v29 = vsel %vm207_vm1, %v301_v27, 0.0  ;;  %v724_v3 = vpack.c.bf16 %v444_v0, %v443_v63 }
 0x227   :  { %v304_v28 = vsel %vm207_vm1, %v300_v26, 0.0 }
 0x228   :  { %305 = vadd.xlane.f32.xlu1 %v304_v28 }
 0x22c   :  { %308 = vadd.xlane.f32.xlu1 %v307_v29 }
 0x2b5   :  { %v306_v30 = vpop.xlane.xlu1 %305 }
 0x2b6   :  { %v311_v31 = vmul.f32 0.03125, %v306_v30 }
 0x2b8   :  { %v313_v32 = vsub.f32 %v300_v26, %v311_v31 }
 0x2b9   :  { %v309_v33 = vpop.xlane.xlu1 %308 }
 0x2ba   :  { %v312_v34 = vmul.f32 0.03125, %v309_v33  ;;  %v315_v35 = vmul.f32 %v313_v32, %v313_v32 }
 0x2bc   :  { %v314_v36 = vsub.f32 %v301_v27, %v312_v34  ;;  %v317_v37 = vsel %vm207_vm1, %v315_v35, 0.0 }
 0x2bd   :  { %318 = vadd.xlane.f32.xlu0 %v317_v37 }
 0x2be   :  { %v316_v38 = vmul.f32 %v314_v36, %v314_v36 }
 0x2c0   :  { %v320_v39 = vsel %vm207_vm1, %v316_v38, 0.0 }
 0x2c1   :  { %321 = vadd.xlane.f32.xlu1 %v320_v39 }
 0x34a   :  { %v319_v49 = vpop.xlane.xlu0 %318 }
 0x34b   :  { %v323_v50 = vmul.f32 0.03125, %v319_v49 }
 0x34d   :  { %v325_v51 = vadd.f32 1e-05, %v323_v50 }
 0x34e   :  { %v322_v52 = vpop.xlane.xlu1 %321 }
 0x34f   :  { %737 = vrsqrt.f32 %v325_v51  ;;  %v324_v53 = vmul.f32 0.03125, %v322_v52 }
 0x351   :  { %v326_v54 = vadd.f32 1e-05, %v324_v53 }
 0x353   :  { %739 = vrsqrt.f32 %v326_v54 }
 0x359   :  { %v738_v55 = vpop.eup %737 }
 0x35a   :  { %v329_v57 = vmul.f32 %v738_v55, %v313_v32 }
 0x35c   :  { %v337_v59 = vmul.f32 %v595_v56, %v329_v57 }
 0x35d   :  { %v740_v60 = vpop.eup %739 }
 0x35e   :  { %v330_v61 = vmul.f32 %v740_v60, %v314_v36  ;;  %v345_v62 = vadd.f32 %v596_v58, %v337_v59 }
 0x360   :  { %v338_v1 = vmul.f32 %v595_v56, %v330_v61  ;;  %674 = vmatprep.mubr.msk.f32.mxu1 %vm207_vm1, %v345_v62 }
 0x362   :  { %v346_v2 = vadd.f32 %v596_v58, %v338_v1 }
 0x364   :  { %675 = vmatmul.mubr.msk.f32.vlgmr.msra.gmra.mrb[0].mxu1 %vm207_vm1, %v346_v2 }
 0x365   :  { %723 = vmatpush3.bf16.msra.mxu1 %v720_v48 }
 0x366   :  { %725 = vmatprep.subr.bf16.mxu1 %v724_v3 }
 0x369   :  { %727 = vmatpush3.bf16.msra.mxu1 %v724_v3 }
 0x36a   :  { %729 = vmatprep.subr.bf16.mxu1 %v728_v6 }
 0x36d   :  { %731 = vmatpush3.bf16.msra.mxu1 %v728_v6 }
 0x36e   :  { %733 = vmatprep.subr.bf16.mxu1 %v732_v9 }
 0x371   :  { %735 = vmatpush3.bf16.msra.mxu1 %v732_v9 }
 0x437   :  { %v676_v11 = vpop.f32.mrb[0].mxu1 }
 0x438   :  { %v436_v12 = vadd.f32 %v676_v11, %v597_v10  ;;  %v430_v13 = vpop.f32.mrb[1].mxu1 }
 0x439   :  { %v431_v14 = vadd.f32 %v597_v10, %v430_v13 }
 0x43a   :  { %v440_v16 = vmax.f32 %v436_v12, 0.0 }
 0x43b   :  { %v439_v15 = vmax.f32 %v431_v14, 0.0 }
 0x43d   :  { %693 = vmatprep.mubr.msk.f32.mxu1 %vm218_vm2, %v439_v15 }
 0x43e   :  { %694 = vmatmul.mubr.msk.f32.vlgmr.msra.gmra.mrb[2].mxu1 %vm218_vm2, %v440_v16 }
 0x511   :  { %v695_v18 = vpop.f32.mrb[2].mxu1 }
 0x512   :  { %v528_v19 = vpop.f32.mrb[3].mxu1  ;;  %v534_v20 = vadd.f32 %v695_v18, %v600_v17 }
 0x513   :  { %v529_v21 = vadd.f32 %v600_v17, %v528_v19 }
 0x514   :  { %v538_v24 = vadd.f32 %v534_v20, %v346_v2 }
 0x515   :  { %v537_v22 = vadd.f32 %v529_v21, %v345_v62 }
 0x516   :  { %v544_v25 = vsel %vm207_vm1, %v538_v24, 0.0 }
 0x517   :  { %v541_v23 = vsel %vm207_vm1, %v537_v22, 0.0 }
 0x518   :  { %542 = vadd.xlane.f32.xlu1 %v541_v23 }
 0x51c   :  { %545 = vadd.xlane.f32.xlu1 %v544_v25 }
 0x5a5   :  { %v543_v26 = vpop.xlane.xlu1 %542 }
 0x5a6   :  { %v547_v27 = vmul.f32 0.03125, %v543_v26 }
 0x5a8   :  { %v549_v28 = vsub.f32 %v537_v22, %v547_v27 }
 0x5a9   :  { %v546_v29 = vpop.xlane.xlu1 %545 }
 0x5aa   :  { %v548_v30 = vmul.f32 0.03125, %v546_v29  ;;  %v551_v31 = vmul.f32 %v549_v28, %v549_v28 }
 0x5ac   :  { %v550_v32 = vsub.f32 %v538_v24, %v548_v30  ;;  %v553_v33 = vsel %vm207_vm1, %v551_v31, 0.0 }
 0x5ad   :  { %554 = vadd.xlane.f32.xlu1 %v553_v33 }
 0x5ae   :  { %v552_v34 = vmul.f32 %v550_v32, %v550_v32 }
 0x5b0   :  { %v556_v35 = vsel %vm207_vm1, %v552_v34, 0.0 }
 0x5b1   :  { %557 = vadd.xlane.f32.xlu1 %v556_v35 }
 0x63a   :  { %v555_v36 = vpop.xlane.xlu1 %554 }
 0x63b   :  { %v559_v37 = vmul.f32 0.03125, %v555_v36 }
 0x63d   :  { %v561_v38 = vadd.f32 1e-05, %v559_v37 }
 0x63e   :  { %v558_v39 = vpop.xlane.xlu1 %557 }
 0x63f   :  { %741 = vrsqrt.f32 %v561_v38  ;;  %v560_v40 = vmul.f32 0.03125, %v558_v39 }
 0x641   :  { %v562_v41 = vadd.f32 1e-05, %v560_v40 }
 0x643   :  { %743 = vrsqrt.f32 %v562_v41 }
 0x649   :  { %v742_v42 = vpop.eup %741 }
 0x64a   :  { %v565_v44 = vmul.f32 %v742_v42, %v549_v28 }
 0x64c   :  { %v573_v46 = vmul.f32 %v603_v43, %v565_v44 }
 0x64d   :  { %v744_v47 = vpop.eup %743 }
 0x64e   :  { %v581_v48 = vadd.f32 %v604_v45, %v573_v46  ;;  %v566_v49 = vmul.f32 %v744_v47, %v550_v32 }
 0x650   :  { %583 = vst.msk [vmem:[%s931_s11] sm:$0xff] %vm207_vm1, %v581_v48  ;;  %v574_v50 = vmul.f32 %v603_v43, %v566_v49 }
 0x652   :  { %v582_v51 = vadd.f32 %v604_v45, %v574_v50 }
 0x654   :  { %584 = vst.msk [vmem:[%s931_s11 + $0x8] sm:$0xff] %vm207_vm1, %v582_v51 }

</bundles_post_ra>
